<compile_context>
chip_gen: v7x
topology: tpu7x:2x2x1
jax: 0.10.0
libtpu: 0.0.40
codegen_flags: <defaults>
</compile_context>

<pallas_src>
import jax
import jax.numpy as jnp
from jax import lax
from jax.experimental import pallas as pl
from jax.experimental.pallas import tpu as pltpu

D_IN, H1, H2, H3, D_OUT = 32, 256, 128, 64, 3
D_OUT_PAD = 8  # lane-padded output channels (kernel stores 8, wrapper slices 3)


def _round_up(n, m):
    return (n + m - 1) // m * m


def _occ_decoder_kernel(x_ref, w1_ref, b1_ref, w2_ref, b2_ref,
                        w3_ref, b3_ref, w4t_ref, b4t_ref, ot_ref):
    # Fused MLP: 4 bf16 MXU matmuls (f32 accumulation) + f32 bias/ReLU.
    x = x_ref[...].astype(jnp.bfloat16)           # in-kernel cast: free VPU filler
    h = jnp.dot(x, w1_ref[...], preferred_element_type=jnp.float32) + b1_ref[...]
    h = jnp.maximum(h, 0.0)
    h = jnp.dot(h.astype(jnp.bfloat16), w2_ref[...],
                preferred_element_type=jnp.float32) + b2_ref[...]
    h = jnp.maximum(h, 0.0)
    h = jnp.dot(h.astype(jnp.bfloat16), w3_ref[...],
                preferred_element_type=jnp.float32) + b3_ref[...]
    h = jnp.maximum(h, 0.0)
    # Lane-dense channel-major last layer: out_T[c, m] = sum_k w4t[c, k] * h[m, k]
    out_t = lax.dot_general(
        w4t_ref[...], h.astype(jnp.bfloat16),
        dimension_numbers=(((1,), (1,)), ((), ())),
        preferred_element_type=jnp.float32) + b4t_ref[...]
    ot_ref[...] = out_t.astype(ot_ref.dtype)


def _choose_tiling(M, tm_max):
    """Returns (tm_eff, m_pad, steps) with m_pad = steps * tm_eff."""
    if M <= 256:
        # Single full-extent tile: block == full array dims, so the (8,128)
        # rule is satisfied even for tiny tiles. 16-row quantum for bf16 packing.
        tm_eff = _round_up(max(M, 16), 16)
        return tm_eff, tm_eff, 1
    # >= 2 grid steps so both v7x TensorCores get work; tile is a multiple of
    # 128 so the channel-major output block's lane dim obeys the (8,128) rule.
    # Padding waste is bounded by 128*steps (<~3% for large M) instead of tm-1.
    steps = max(2, pl.cdiv(M, tm_max))
    tm_eff = _round_up(pl.cdiv(M, steps), 128)
    return tm_eff, steps * tm_eff, steps


def occ_decoder_pallas(x_flat, params, *, tm=4096):
    """x_flat: [M, D_IN] float. Returns [M, D_OUT] float32."""
    (w1, b1), (w2, b2), (w3, b3), (w4, b4) = params
    M = x_flat.shape[0]
    assert x_flat.shape[1] == D_IN  # TODO(synk): LazyLinear would infer this dim

    tm_eff, m_pad, steps = _choose_tiling(M, tm)

    # f32 input straight into the kernel (cast to bf16 on-chip); pad rows only
    # if needed. Padded rows are independent and sliced off afterwards.
    x = x_flat.astype(jnp.float32)
    if m_pad != M:
        x = jnp.pad(x, ((0, m_pad - M), (0, 0)))

    # bf16 weights (MXU-native); f32 biases. Layer 4 stored transposed + padded
    # to 8 output channels: [D_OUT_PAD, H3], bias as a [D_OUT_PAD, 1] column.
    w1b = w1.astype(jnp.bfloat16)
    w2b = w2.astype(jnp.bfloat16)
    w3b = w3.astype(jnp.bfloat16)
    w4t = jnp.zeros((D_OUT_PAD, H3), jnp.bfloat16).at[:D_OUT, :].set(
        w4.T.astype(jnp.bfloat16))
    b1f = b1.reshape(1, H1).astype(jnp.float32)
    b2f = b2.reshape(1, H2).astype(jnp.float32)
    b3f = b3.reshape(1, H3).astype(jnp.float32)
    b4t = jnp.zeros((D_OUT_PAD, 1), jnp.float32).at[:D_OUT, 0].set(
        b4.reshape(-1).astype(jnp.float32))

    def resident(shape):
        # Whole-array block, constant index_map -> stays VMEM-resident.
        return pl.BlockSpec(shape, lambda i: (0,) * len(shape))

    per_row_macs = D_IN * H1 + H1 * H2 + H2 * H3 + H3 * D_OUT_PAD
    weight_bytes = 2 * per_row_macs + 4 * (H1 + H2 + H3 + D_OUT_PAD)
    cost = pl.CostEstimate(
        flops=2 * m_pad * per_row_macs,
        transcendentals=0,
        bytes_accessed=m_pad * (D_IN * 4 + D_OUT_PAD * 4) + weight_bytes,
    )

    out_t_pad = pl.pallas_call(
        _occ_decoder_kernel,
        out_shape=jax.ShapeDtypeStruct((D_OUT_PAD, m_pad), jnp.float32),
        grid_spec=pltpu.PrefetchScalarGridSpec(
            num_scalar_prefetch=0,
            grid=(steps,),
            in_specs=[
                pl.BlockSpec((tm_eff, D_IN), lambda i: (i, 0)),    # x tile (f32)
                resident((D_IN, H1)), resident((1, H1)),           # mlp1
                resident((H1, H2)),   resident((1, H2)),           # mlp2
                resident((H2, H3)),   resident((1, H3)),           # mlp3
                resident((D_OUT_PAD, H3)), resident((D_OUT_PAD, 1)),  # mlp4 (T, padded)
            ],
            out_specs=pl.BlockSpec((D_OUT_PAD, tm_eff), lambda i: (0, i)),
        ),
        compiler_params=pltpu.CompilerParams(
            dimension_semantics=("parallel",),
            vmem_limit_bytes=32 * 1024 * 1024,   # v5e's 16 MiB scoped default is too low at tm=4096
        ),
        cost_estimate=cost,
    )(x, w1b, b1f, w2b, b2f, w3b, b3f, w4t, b4t)

    # Channel-major [D_OUT_PAD, m_pad] -> [M, D_OUT]
    return out_t_pad[:D_OUT, :M].T


def init_params(key):
    """Deterministic init mimicking nn.Linear (uniform +-1/sqrt(fan_in)), f32 master copy."""
    dims = [(D_IN, H1), (H1, H2), (H2, H3), (H3, D_OUT)]
    params = []
    for (fan_in, fan_out) in dims:
        key, kw, kb = jax.random.split(key, 3)
        bound = 1.0 / (fan_in ** 0.5)
        w = jax.random.uniform(kw, (fan_in, fan_out), jnp.float32, -bound, bound)
        b = jax.random.uniform(kb, (1, fan_out), jnp.float32, -bound, bound)
        params.append((w, b))
    return params


def reference_forward(x_flat, params):
    (w1, b1), (w2, b2), (w3, b3), (w4, b4) = params
    h = jnp.maximum(x_flat @ w1 + b1, 0.0)
    h = jnp.maximum(h @ w2 + b2, 0.0)
    h = jnp.maximum(h @ w3 + b3, 0.0)
    return h @ w4 + b4


if __name__ == "__main__":
    key = jax.random.PRNGKey(0)
    k_x, k_p = jax.random.split(key)

    B, N = 2, 64  # mesh_data: [B, N, D_IN] -- small test shapes
    mesh_data = jax.random.normal(k_x, (B, N, D_IN), jnp.float32)
    params = init_params(k_p)

    x_flat = mesh_data.reshape(B * N, D_IN)           # glue reshape in plain JAX
    out_flat = occ_decoder_pallas(x_flat, params)     # default tm=4096 (auto-clamped)
    out = out_flat.reshape(B, N, D_OUT)
    jax.block_until_ready(out)

    ref = reference_forward(x_flat, params).reshape(B, N, D_OUT)
    assert out.shape == (B, N, D_OUT)
    # bf16 matmul operands w/ f32 accumulation -> loosened tolerance (~1e-2 rel).
    assert jnp.allclose(out, ref, atol=5e-2, rtol=5e-2), "mismatch vs reference"

    print("KERNEL_OK")
</pallas_src>

<mosaic_0001>
module attributes {stable_mosaic.version = 11 : i64} {
  func.func @_occ_decoder_kernel(%arg0: i32, %arg1: memref<128x32xf32, #tpu.memory_space<vmem>>, %arg2: memref<32x256xbf16, #tpu.memory_space<vmem>>, %arg3: memref<1x256xf32, #tpu.memory_space<vmem>>, %arg4: memref<256x128xbf16, #tpu.memory_space<vmem>>, %arg5: memref<1x128xf32, #tpu.memory_space<vmem>>, %arg6: memref<128x64xbf16, #tpu.memory_space<vmem>>, %arg7: memref<1x64xf32, #tpu.memory_space<vmem>>, %arg8: memref<8x64xbf16, #tpu.memory_space<vmem>>, %arg9: memref<8x1xf32, #tpu.memory_space<vmem>>, %arg10: memref<8x128xf32, #tpu.memory_space<vmem>>) attributes {dimension_semantics = [#tpu.dimension_semantics<parallel>], iteration_bounds = array<i64: 1>, scalar_prefetch = 0 : i64, scratch_operands = 0 : i64, tpu.core_type = #tpu.core_type<tc>, window_params = [{transform_indices = @transform_0, window_bounds = array<i64: 128, 32>}, {pipeline_mode = #tpu.pipeline_mode<synchronous>, transform_indices = @transform_1, window_bounds = array<i64: 32, 256>}, {pipeline_mode = #tpu.pipeline_mode<synchronous>, transform_indices = @transform_2, window_bounds = array<i64: 1, 256>}, {pipeline_mode = #tpu.pipeline_mode<synchronous>, transform_indices = @transform_3, window_bounds = array<i64: 256, 128>}, {pipeline_mode = #tpu.pipeline_mode<synchronous>, transform_indices = @transform_4, window_bounds = array<i64: 1, 128>}, {pipeline_mode = #tpu.pipeline_mode<synchronous>, transform_indices = @transform_5, window_bounds = array<i64: 128, 64>}, {pipeline_mode = #tpu.pipeline_mode<synchronous>, transform_indices = @transform_6, window_bounds = array<i64: 1, 64>}, {pipeline_mode = #tpu.pipeline_mode<synchronous>, transform_indices = @transform_7, window_bounds = array<i64: 8, 64>}, {pipeline_mode = #tpu.pipeline_mode<synchronous>, transform_indices = @transform_8, window_bounds = array<i64: 8, 1>}, {transform_indices = @transform_9, window_bounds = array<i64: 8, 128>}]} {
    %c0 = arith.constant 0 : index
    %c0_0 = arith.constant 0 : index
    %0 = vector.load %arg1[%c0, %c0_0] : memref<128x32xf32, #tpu.memory_space<vmem>>, vector<128x32xf32>
    %1 = arith.truncf %0 : vector<128x32xf32> to vector<128x32xbf16>
    %c0_1 = arith.constant 0 : index
    %c0_2 = arith.constant 0 : index
    %2 = vector.load %arg2[%c0_1, %c0_2] : memref<32x256xbf16, #tpu.memory_space<vmem>>, vector<32x256xbf16>
    %cst = arith.constant dense<0.000000e+00> : vector<128x256xf32>
    %3 = tpu.matmul %1, %2, %cst {dimension_numbers = #tpu.dot_dimension_numbers<[1], [0], [0], [1], [0, 0, 1, 1], [], []>} : vector<128x32xbf16>, vector<32x256xbf16>, vector<128x256xf32> -> vector<128x256xf32>
    %c0_3 = arith.constant 0 : index
    %c0_4 = arith.constant 0 : index
    %4 = vector.load %arg3[%c0_3, %c0_4] : memref<1x256xf32, #tpu.memory_space<vmem>>, vector<1x256xf32>
    %5 = vector.broadcast %4 : vector<1x256xf32> to vector<128x256xf32>
    %6 = arith.addf %3, %5 : vector<128x256xf32>
    %cst_5 = arith.constant 0.000000e+00 : f32
    %7 = vector.broadcast %cst_5 : f32 to vector<128x256xf32>
    %8 = arith.maximumf %6, %7 : vector<128x256xf32>
    %9 = arith.truncf %8 : vector<128x256xf32> to vector<128x256xbf16>
    %c0_6 = arith.constant 0 : index
    %c0_7 = arith.constant 0 : index
    %10 = vector.load %arg4[%c0_6, %c0_7] : memref<256x128xbf16, #tpu.memory_space<vmem>>, vector<256x128xbf16>
    %cst_8 = arith.constant dense<0.000000e+00> : vector<128x128xf32>
    %11 = tpu.matmul %9, %10, %cst_8 {dimension_numbers = #tpu.dot_dimension_numbers<[1], [0], [0], [1], [0, 0, 1, 1], [], []>} : vector<128x256xbf16>, vector<256x128xbf16>, vector<128x128xf32> -> vector<128x128xf32>
    %c0_9 = arith.constant 0 : index
    %c0_10 = arith.constant 0 : index
    %12 = vector.load %arg5[%c0_9, %c0_10] : memref<1x128xf32, #tpu.memory_space<vmem>>, vector<1x128xf32>
    %13 = vector.broadcast %12 : vector<1x128xf32> to vector<128x128xf32>
    %14 = arith.addf %11, %13 : vector<128x128xf32>
    %cst_11 = arith.constant 0.000000e+00 : f32
    %15 = vector.broadcast %cst_11 : f32 to vector<128x128xf32>
    %16 = arith.maximumf %14, %15 : vector<128x128xf32>
    %17 = arith.truncf %16 : vector<128x128xf32> to vector<128x128xbf16>
    %c0_12 = arith.constant 0 : index
    %c0_13 = arith.constant 0 : index
    %18 = vector.load %arg6[%c0_12, %c0_13] : memref<128x64xbf16, #tpu.memory_space<vmem>>, vector<128x64xbf16>
    %cst_14 = arith.constant dense<0.000000e+00> : vector<128x64xf32>
    %19 = tpu.matmul %17, %18, %cst_14 {dimension_numbers = #tpu.dot_dimension_numbers<[1], [0], [0], [1], [0, 0, 1, 1], [], []>} : vector<128x128xbf16>, vector<128x64xbf16>, vector<128x64xf32> -> vector<128x64xf32>
    %c0_15 = arith.constant 0 : index
    %c0_16 = arith.constant 0 : index
    %20 = vector.load %arg7[%c0_15, %c0_16] : memref<1x64xf32, #tpu.memory_space<vmem>>, vector<1x64xf32>
    %21 = vector.broadcast %20 : vector<1x64xf32> to vector<128x64xf32>
    %22 = arith.addf %19, %21 : vector<128x64xf32>
    %cst_17 = arith.constant 0.000000e+00 : f32
    %23 = vector.broadcast %cst_17 : f32 to vector<128x64xf32>
    %24 = arith.maximumf %22, %23 : vector<128x64xf32>
    %c0_18 = arith.constant 0 : index
    %c0_19 = arith.constant 0 : index
    %25 = vector.load %arg8[%c0_18, %c0_19] : memref<8x64xbf16, #tpu.memory_space<vmem>>, vector<8x64xbf16>
    %26 = arith.truncf %24 : vector<128x64xf32> to vector<128x64xbf16>
    %cst_20 = arith.constant dense<0.000000e+00> : vector<8x128xf32>
    %27 = tpu.matmul %25, %26, %cst_20 {dimension_numbers = #tpu.dot_dimension_numbers<[1], [1], [0], [0], [0, 0, 1, 0], [], []>} : vector<8x64xbf16>, vector<128x64xbf16>, vector<8x128xf32> -> vector<8x128xf32>
    %c0_21 = arith.constant 0 : index
    %c0_22 = arith.constant 0 : index
    %28 = vector.load %arg9[%c0_21, %c0_22] : memref<8x1xf32, #tpu.memory_space<vmem>>, vector<8x1xf32>
    %29 = vector.broadcast %28 : vector<8x1xf32> to vector<8x128xf32>
    %30 = arith.addf %27, %29 : vector<8x128xf32>
    %c0_23 = arith.constant 0 : index
    %c0_24 = arith.constant 0 : index
    %31 = vector.load %arg10[%c0_23, %c0_24] : memref<8x128xf32, #tpu.memory_space<vmem>>, vector<8x128xf32>
    tpu.vector_store %arg10[%c0_23, %c0_24], %30 {strides = array<i32>} : memref<8x128xf32, #tpu.memory_space<vmem>>, vector<8x128xf32>,
    return
  }
  func.func @transform_0(%arg0: i32) -> (i32, i32) {
    %c0_i32 = arith.constant 0 : i32
    %c0_i32_0 = arith.constant 0 : i32
    return %arg0, %c0_i32 : i32, i32
  }
  func.func @transform_1(%arg0: i32) -> (i32, i32) {
    %c0_i32 = arith.constant 0 : i32
    %c0_i32_0 = arith.constant 0 : i32
    %c0_i32_1 = arith.constant 0 : i32
    return %c0_i32, %c0_i32_0 : i32, i32
  }
  func.func @transform_2(%arg0: i32) -> (i32, i32) {
    %c0_i32 = arith.constant 0 : i32
    %c0_i32_0 = arith.constant 0 : i32
    %c0_i32_1 = arith.constant 0 : i32
    return %c0_i32, %c0_i32_0 : i32, i32
  }
  func.func @transform_3(%arg0: i32) -> (i32, i32) {
    %c0_i32 = arith.constant 0 : i32
    %c0_i32_0 = arith.constant 0 : i32
    %c0_i32_1 = arith.constant 0 : i32
    return %c0_i32, %c0_i32_0 : i32, i32
  }
  func.func @transform_4(%arg0: i32) -> (i32, i32) {
    %c0_i32 = arith.constant 0 : i32
    %c0_i32_0 = arith.constant 0 : i32
    %c0_i32_1 = arith.constant 0 : i32
    return %c0_i32, %c0_i32_0 : i32, i32
  }
  func.func @transform_5(%arg0: i32) -> (i32, i32) {
    %c0_i32 = arith.constant 0 : i32
    %c0_i32_0 = arith.constant 0 : i32
    %c0_i32_1 = arith.constant 0 : i32
    return %c0_i32, %c0_i32_0 : i32, i32
  }
  func.func @transform_6(%arg0: i32) -> (i32, i32) {
    %c0_i32 = arith.constant 0 : i32
    %c0_i32_0 = arith.constant 0 : i32
    %c0_i32_1 = arith.constant 0 : i32
    return %c0_i32, %c0_i32_0 : i32, i32
  }
  func.func @transform_7(%arg0: i32) -> (i32, i32) {
    %c0_i32 = arith.constant 0 : i32
    %c0_i32_0 = arith.constant 0 : i32
    %c0_i32_1 = arith.constant 0 : i32
    return %c0_i32, %c0_i32_0 : i32, i32
  }
  func.func @transform_8(%arg0: i32) -> (i32, i32) {
    %c0_i32 = arith.constant 0 : i32
    %c0_i32_0 = arith.constant 0 : i32
    %c0_i32_1 = arith.constant 0 : i32
    return %c0_i32, %c0_i32_0 : i32, i32
  }
  func.func @transform_9(%arg0: i32) -> (i32, i32) {
    %c0_i32 = arith.constant 0 : i32
    %c0_i32_0 = arith.constant 0 : i32
    return %c0_i32, %arg0 : i32, i32
  }
}

</mosaic_0001>

<bundles_post_ra>
// kernel: tpu_custom_call.1
= control target key start
LH: loop header
LB: loop body
LE: loop exit
PB: predicated region body
PF: predicated region fallthrough
CT: control target
= control target key end

     0   :  { %v1057_v2 = vmov 0   ;;  %vm94_vm0 = vcmask 261120   ;;  %s1377_s0 = inlined_call_operand.vmem [shape: f32[128,32], index: 0, kind: input, shape index: {}]   ;;  %s1378_s1 = inlined_call_operand.vmem [shape: bf16[32,256], index: 1, kind: input, shape index: {}]   ;;  %s1379_s2 = inlined_call_operand.vmem [shape: f32[1,256], index: 2, kind: input, shape index: {}]   ;;  %s1380_s3 = inlined_call_operand.vmem [shape: bf16[256,128], index: 3, kind: input, shape index: {}]   ;;  %s1381_s4 = inlined_call_operand.vmem [shape: f32[1,128], index: 4, kind: input, shape index: {}]   ;;  %s1382_s5 = inlined_call_operand.vmem [shape: bf16[128,64], index: 5, kind: input, shape index: {}]   ;;  %s1383_s6 = inlined_call_operand.vmem [shape: f32[1,64], index: 6, kind: input, shape index: {}]   ;;  %s1384_s7 = inlined_call_operand.vmem [shape: bf16[8,64], index: 7, kind: input, shape index: {}]   ;;  %s1385_s8 = inlined_call_operand.vmem [shape: f32[8,1], index: 8, kind: input, shape index: {}]   ;;  %s1386_s9 = inlined_call_operand.hbm [shape: f32[8,128], index: 9, kind: output, shape index: {}]  }
   0x1   :  { %v1003_v0 = vld [vmem:[%s1378_s1 + $0x4] ss:$8 sps:$4 sm:$0xff]   ;;  %v1005_v1 = vld [vmem:[%s1378_s1] ss:$8 sps:$4 sm:$0xff]   ;;  %151 = vmatprep.mubr.bf16.mxu0 %v1057_v2  ;;  %1002 = vset.pattern.permute.xlu0 %v1057_v2  ;;  %v1006_v3 = vld [vmem:[%s1378_s1 + $0x14] ss:$8 sps:$4 sm:$0xff]  }
   0x2   :  { %119 = vmatprep.subr.bf16.mxu0 %v1003_v0  ;;  %v1008_v4 = vld [vmem:[%s1378_s1 + $0x10] ss:$8 sps:$4 sm:$0xff]   ;;  %v34_v5 = vld [vmem:[%s1377_s0] sm:$0xff]  ;;  %v35_v6 = vld [vmem:[%s1377_s0 + $0x8] sm:$0xff] }
   0x3   :  { %120 = vmatpush1.bf16.msra.mxu0 %v1005_v1  ;;  %v50_v7 = vpack.c.bf16 %v35_v6, %v34_v5  ;;  %v1009_v8 = vld [vmem:[%s1380_s3 + $0x40] sm:$0xff]   ;;  %v36_v9 = vld [vmem:[%s1377_s0 + $0x10] sm:$0xff]  ;;  %v37_v10 = vld [vmem:[%s1377_s0 + $0x18] sm:$0xff] }
   0x4   :  { %121 = vmatprep.subr.bf16.mxu0 %v1006_v3  ;;  %v1010_v11 = vld [vmem:[%s1380_s3] sm:$0xff]   ;;  %857 = vmatprep.subr.bf16.mxu1 %v1009_v8  ;;  %v1011_v12 = vld [vmem:[%s1380_s3 + $0x48] sm:$0xff]   ;;  %v1013_v14 = vld [vmem:[%s1380_s3 + $0x50] sm:$0xff]   ;;  %v51_v15 = vpack.c.bf16 %v37_v10, %v36_v9 }
   0x5   :  { %858 = vmatpush3.bf16.msra.mxu1 %v1010_v11  ;;  %v1012_v13 = vld [vmem:[%s1380_s3 + $0x8] sm:$0xff]   ;;  %v1014_v16 = vld [vmem:[%s1380_s3 + $0x10] sm:$0xff]   ;;  %v1015_v17 = vld [vmem:[%s1380_s3 + $0x58] sm:$0xff]  }
   0x6   :  { %859 = vmatprep.subr.bf16.mxu1 %v1011_v12  ;;  %v38_v18 = vld [vmem:[%s1377_s0 + $0x20] sm:$0xff]  ;;  %v39_v19 = vld [vmem:[%s1377_s0 + $0x28] sm:$0xff]  ;;  %v1016_v20 = vld [vmem:[%s1380_s3 + $0x18] sm:$0xff]  }
   0x7   :  { %122 = vmatpush1.bf16.msra.mxu0 %v1008_v4  ;;  %v1017_v21 = vld [vmem:[%s1380_s3 + $0x60] sm:$0xff]   ;;  %v52_v23 = vpack.c.bf16 %v39_v19, %v38_v18  ;;  %v1019_v24 = vld [vmem:[%s1380_s3 + $0x68] sm:$0xff]   ;;  %v40_v25 = vld [vmem:[%s1377_s0 + $0x30] sm:$0xff] }
   0x8   :  { %v1018_v22 = vld [vmem:[%s1380_s3 + $0x20] sm:$0xff]   ;;  %v41_v26 = vld [vmem:[%s1377_s0 + $0x38] sm:$0xff] }
   0x9   :  { %860 = vmatpush3.bf16.msra.mxu1 %v1012_v13 }
   0xa   :  { %822 = vmatmul.mubr.msk.bf16.vlgmr.msra.gmra.mrb[0].mxu0 %vm94_vm0, %v50_v7  ;;  %861 = vmatprep.subr.bf16.mxu1 %v1013_v14 }
   0xb   :  { %161 = vmatprep.mubr.bf16.mxu0 %v1057_v2 }
   0xd   :  { %862 = vmatpush3.bf16.msra.mxu1 %v1014_v16 }
   0xe   :  { %863 = vmatprep.subr.bf16.mxu1 %v1015_v17 }
  0x11   :  { %864 = vmatpush3.bf16.msra.mxu1 %v1016_v20 }
  0x12   :  { %823 = vmatmul.mubr.msk.bf16.gmra.mrb[4].mxu0 %vm94_vm0, %v51_v15  ;;  %865 = vmatprep.subr.bf16.mxu1 %v1017_v21 }
  0x13   :  { %171 = vmatprep.mubr.bf16.mxu0 %v1057_v2 }
  0x15   :  { %866 = vmatpush3.bf16.msra.mxu1 %v1018_v22 }
  0x16   :  { %867 = vmatprep.subr.bf16.mxu1 %v1019_v24 }
  0x1a   :  { %824 = vmatmul.mubr.msk.bf16.gmra.mrb[8].mxu0 %vm94_vm0, %v52_v23 }
  0x1b   :  { %181 = vmatprep.mubr.bf16.mxu0 %v1057_v2 }
  0x1c   :  { %14 = vsyncpa [#allocation3], 0  ;;  %v53_v27 = vpack.c.bf16 %v41_v26, %v40_v25  ;;  %v42_v28 = vld [vmem:[%s1377_s0 + $0x40] sm:$0xff]  ;;  %v43_v29 = vld [vmem:[%s1377_s0 + $0x48] sm:$0xff]  ;;  %v64_v51 = vlaneseq  ;;  %vm1059_vm1 = vmmov 0   ;;  %vm735_vm2 = vcmask 523264  }
  0x1d   :  { %v54_v30 = vpack.c.bf16 %v43_v29, %v42_v28  ;;  %v44_v31 = vld [vmem:[%s1377_s0 + $0x50] sm:$0xff]  ;;  %v45_v32 = vld [vmem:[%s1377_s0 + $0x58] sm:$0xff]  ;;  %v46_v34 = vld [vmem:[%s1377_s0 + $0x60] sm:$0xff] }
  0x1e   :  { %v55_v33 = vpack.c.bf16 %v45_v32, %v44_v31  ;;  %v47_v35 = vld [vmem:[%s1377_s0 + $0x68] sm:$0xff]  ;;  %v48_v37 = vld [vmem:[%s1377_s0 + $0x70] sm:$0xff]  ;;  %v49_v38 = vld [vmem:[%s1377_s0 + $0x78] sm:$0xff]  ;;  %v65_v52 = vshrl.u32 %v64_v51, 7  ;;  %s1060_s0 = smov [#allocation2]  }
  0x1f   :  { %v56_v36 = vpack.c.bf16 %v47_v35, %v46_v34  ;;  %v57_v39 = vpack.c.bf16 %v49_v38, %v48_v37  ;;  %v1020_v40 = vld [vmem:[%s1380_s3 + $0x28] sm:$0xff]   ;;  %v1021_v41 = vld [vmem:[%s1380_s3 + $0x70] sm:$0xff]   ;;  %v1023_v43 = vld [vmem:[%s1380_s3 + $0x78] sm:$0xff]   ;;  %s810_s12 = sshll.u32 %s1060_s0, 4  ;;  %s811_s12 = int_to_ptr.vmem [resolvable:$true] %s810_s12 }
  0x20   :  { %868 = vmatpush3.bf16.msra.mxu1 %v1020_v40  ;;  %v1022_v42 = vld [vmem:[%s1380_s3 + $0x30] sm:$0xff]   ;;  %v1024_v44 = vld [vmem:[%s1380_s3 + $0x38] sm:$0xff]   ;;  %v1025_v45 = vld [vmem:[%s1382_s5] sm:$0xff]   ;;  %v66_v53 = vsub.s32 0, %v65_v52  ;;  %v70_v55 = vsub.s32 1, %v65_v52  ;;  %s1033_s13 = scalar_lea.vmem %s811_s12, 128  ;;  %p1038_p1 = scmp.lt.s32.totalorder %s811_s12, %s811_s12 }
  0x21   :  { %869 = vmatprep.subr.bf16.mxu1 %v1021_v41  ;;  %v1026_v46 = vld [vmem:[%s1382_s5 + $0x8] sm:$0xff]   ;;  %946 = vmatprep.subr.bf16.mxu0 %v1025_v45  ;;  %v1027_v47 = vld [vmem:[%s1382_s5 + $0x10] sm:$0xff]   ;;  %v1028_v48 = vld [vmem:[%s1382_s5 + $0x18] sm:$0xff]   ;;  %p1034_p0 = scmp.ne.s32.totalorder %s811_s12, %s1033_s13  ;;  %p1039_p2 = scmp.lt.s32.totalorder %s1033_s13, %s1033_s13 }
  0x22   :  { %825 = vmatmul.mubr.msk.bf16.gmra.mrb[12].mxu0 %vm94_vm0, %v53_v27  ;;  %v1029_v49 = vld [vmem:[%s1382_s5 + $0x20] sm:$0xff]   ;;  %v1030_v50 = vld [vmem:[%s1382_s5 + $0x28] sm:$0xff]  }
  0x23   :  { %191 = vmatprep.mubr.bf16.mxu0 %v1057_v2  ;;  %947 = vmatpush3.bf16.msra.mxu0 %v1025_v45  ;;  %v62_v54 = vld [vmem:[%s1379_s2] sm:$0x3]  ;;  %p1040_p3 = por %p1039_p2, %p1038_p1 }
  0x24   :  { %870 = vmatpush3.bf16.msra.mxu1 %v1022_v42  ;;  %948 = vmatprep.subr.bf16.mxu0 %v1026_v46  ;;  %v1257_v56 = vrot.slane %v62_v54, %v66_v53  ;;  %v1259_v57 = vrot.slane %v62_v54, %v70_v55 }
  0x25   :  { %871 = vmatprep.subr.bf16.mxu1 %v1023_v43  ;;  %p1041_p4 = pnand %p1040_p3, %p1034_p0 }
  0x27   :  { %949 = vmatpush3.bf16.msra.mxu0 %v1026_v46 }
  0x28   :  { %872 = vmatpush3.bf16.msra.mxu1 %v1024_v44  ;;  %950 = vmatprep.subr.bf16.mxu0 %v1027_v47 }
  0x2a   :  { %826 = vmatmul.mubr.msk.bf16.gmra.mrb[16].mxu0 %vm94_vm0, %v54_v30 }
  0x2b   :  { %201 = vmatprep.mubr.bf16.mxu0 %v1057_v2  ;;  %951 = vmatpush3.bf16.msra.mxu0 %v1027_v47 }
  0x2c   :  { %952 = vmatprep.subr.bf16.mxu0 %v1028_v48 }
  0x2f   :  { %953 = vmatpush3.bf16.msra.mxu0 %v1028_v48 }
  0x30   :  { %954 = vmatprep.subr.bf16.mxu0 %v1029_v49 }
  0x32   :  { %827 = vmatmul.mubr.msk.bf16.gmra.mrb[20].mxu0 %vm94_vm0, %v55_v33 }
  0x33   :  { %211 = vmatprep.mubr.bf16.mxu0 %v1057_v2  ;;  %955 = vmatpush3.bf16.msra.mxu0 %v1029_v49 }
  0x34   :  { %956 = vmatprep.subr.bf16.mxu0 %v1030_v50 }
  0x37   :  { %957 = vmatpush3.bf16.msra.mxu0 %v1030_v50 }
  0x3a   :  { %828 = vmatmul.mubr.msk.bf16.gmra.mrb[24].mxu0 %vm94_vm0, %v56_v36 }
  0x3b   :  { %221 = vmatprep.mubr.bf16.mxu0 %v1057_v2 }
  0x42   :  { %829 = vmatmul.mubr.msk.bf16.gmra.mrb[28].mxu0 %vm94_vm0, %v57_v39 }
  0xdd   :  { %v153_v58 = vpop.f32.mrb[0].mxu0 }
  0xde   :  { %v154_v59 = vadd.f32 %v153_v58, %v1257_v56  ;;  %v155_v60 = vpop.f32.mrb[1].mxu0 }
  0xdf   :  { %v156_v61 = vadd.f32 %v155_v60, %v1259_v57  ;;  %v157_v62 = vpop.f32.mrb[2].mxu0 }
  0xe0   :  { %v158_v63 = vadd.f32 %v157_v62, %v1257_v56  ;;  %v159_v0 = vpop.f32.mrb[3].mxu0  ;;  %v232_v2 = vmax.f32 %v154_v59, 0.0 }
  0xe1   :  { %v160_v1 = vadd.f32 %v159_v0, %v1259_v57  ;;  %v233_v4 = vmax.f32 %v156_v61, 0.0 }
  0xe2   :  { %v234_v3 = vmax.f32 %v158_v63, 0.0 }
  0xe3   :  { %v235_v5 = vmax.f32 %v160_v1, 0.0 }
  0xe4   :  { %v264_v6 = vpack.c.bf16 %v234_v3, %v232_v2 }
  0xe5   :  { %v163_v7 = vpop.f32.mrb[4].mxu0  ;;  %v265_v8 = vpack.c.bf16 %v235_v5, %v233_v4 }
  0xe6   :  { %v164_v9 = vadd.f32 %v163_v7, %v1257_v56  ;;  %v165_v10 = vpop.f32.mrb[5].mxu0 }
  0xe7   :  { %v166_v11 = vadd.f32 %v165_v10, %v1259_v57  ;;  %v167_v12 = vpop.f32.mrb[6].mxu0  ;;  %447 = vmatprep.mubr.bf16.mxu1 %v265_v8 }
  0xe8   :  { %v168_v13 = vadd.f32 %v167_v12, %v1257_v56  ;;  %v169_v14 = vpop.f32.mrb[7].mxu0  ;;  %448 = vmatmul.mubr.bf16.vlgmr.msra.gmra.mrb[0].mxu1 %v264_v6  ;;  %v236_v16 = vmax.f32 %v164_v9, 0.0 }
  0xe9   :  { %v170_v15 = vadd.f32 %v169_v14, %v1259_v57  ;;  %v237_v18 = vmax.f32 %v166_v11, 0.0 }
  0xea   :  { %v238_v17 = vmax.f32 %v168_v13, 0.0 }
  0xeb   :  { %v239_v19 = vmax.f32 %v170_v15, 0.0 }
  0xec   :  { %v266_v20 = vpack.c.bf16 %v238_v17, %v236_v16 }
  0xed   :  { %v267_v21 = vpack.c.bf16 %v239_v19, %v237_v18  ;;  %v173_v22 = vpop.f32.mrb[8].mxu0 }
  0xee   :  { %v174_v23 = vadd.f32 %v173_v22, %v1257_v56  ;;  %v175_v24 = vpop.f32.mrb[9].mxu0 }
  0xef   :  { %v176_v25 = vadd.f32 %v175_v24, %v1259_v57  ;;  %v177_v26 = vpop.f32.mrb[10].mxu0  ;;  %455 = vmatprep.mubr.bf16.mxu1 %v267_v21 }
  0xf0   :  { %v178_v27 = vadd.f32 %v177_v26, %v1257_v56  ;;  %v179_v28 = vpop.f32.mrb[11].mxu0  ;;  %456 = vmatmul.mubr.bf16.gmra.mrb[4].mxu1 %v266_v20  ;;  %v240_v30 = vmax.f32 %v174_v23, 0.0 }
  0xf1   :  { %v180_v29 = vadd.f32 %v179_v28, %v1259_v57  ;;  %v241_v32 = vmax.f32 %v176_v25, 0.0 }
  0xf2   :  { %v242_v31 = vmax.f32 %v178_v27, 0.0 }
  0xf3   :  { %v243_v33 = vmax.f32 %v180_v29, 0.0 }
  0xf4   :  { %v268_v34 = vpack.c.bf16 %v242_v31, %v240_v30 }
  0xf5   :  { %v269_v35 = vpack.c.bf16 %v243_v33, %v241_v32  ;;  %v183_v36 = vpop.f32.mrb[12].mxu0 }
  0xf6   :  { %v184_v37 = vadd.f32 %v183_v36, %v1257_v56  ;;  %v185_v38 = vpop.f32.mrb[13].mxu0 }
  0xf7   :  { %v186_v39 = vadd.f32 %v185_v38, %v1259_v57  ;;  %v187_v40 = vpop.f32.mrb[14].mxu0  ;;  %463 = vmatprep.mubr.bf16.mxu1 %v269_v35 }
  0xf8   :  { %v188_v41 = vadd.f32 %v187_v40, %v1257_v56  ;;  %v189_v42 = vpop.f32.mrb[15].mxu0  ;;  %464 = vmatmul.mubr.bf16.gmra.mrb[8].mxu1 %v268_v34  ;;  %v244_v44 = vmax.f32 %v184_v37, 0.0 }
  0xf9   :  { %v190_v43 = vadd.f32 %v189_v42, %v1259_v57  ;;  %v245_v46 = vmax.f32 %v186_v39, 0.0 }
  0xfa   :  { %v246_v45 = vmax.f32 %v188_v41, 0.0 }
  0xfb   :  { %v247_v47 = vmax.f32 %v190_v43, 0.0 }
  0xfc   :  { %v270_v48 = vpack.c.bf16 %v246_v45, %v244_v44  ;;  %v1031_v44 = vld [vmem:[%s1382_s5 + $0x30] sm:$0xff]   ;;  %v1302_v45 = vld [vmem:[%s1381_s4] ss:$0 sm:$0xff] }
  0xfd   :  { %v271_v49 = vpack.c.bf16 %v247_v47, %v245_v46  ;;  %v193_v50 = vpop.f32.mrb[16].mxu0  ;;  %958 = vmatprep.subr.bf16.mxu0 %v1031_v44 }
  0xfe   :  { %v194_v51 = vadd.f32 %v193_v50, %v1257_v56  ;;  %v195_v52 = vpop.f32.mrb[17].mxu0  ;;  %959 = vmatpush3.bf16.msra.mxu0 %v1031_v44 }
  0xff   :  { %v196_v53 = vadd.f32 %v195_v52, %v1259_v57  ;;  %v197_v54 = vpop.f32.mrb[18].mxu0  ;;  %471 = vmatprep.mubr.bf16.mxu1 %v271_v49 }
 0x100   :  { %v198_v55 = vadd.f32 %v197_v54, %v1257_v56  ;;  %v199_v58 = vpop.f32.mrb[19].mxu0  ;;  %472 = vmatmul.mubr.bf16.gmra.mrb[12].mxu1 %v270_v48  ;;  %v248_v60 = vmax.f32 %v194_v51, 0.0 }
 0x101   :  { %v200_v59 = vadd.f32 %v199_v58, %v1259_v57  ;;  %v249_v62 = vmax.f32 %v196_v53, 0.0 }
 0x102   :  { %v250_v61 = vmax.f32 %v198_v55, 0.0 }
 0x103   :  { %v251_v63 = vmax.f32 %v200_v59, 0.0 }
 0x104   :  { %v272_v0 = vpack.c.bf16 %v250_v61, %v248_v60 }
 0x105   :  { %v273_v1 = vpack.c.bf16 %v251_v63, %v249_v62  ;;  %v203_v2 = vpop.f32.mrb[20].mxu0 }
 0x106   :  { %v204_v3 = vadd.f32 %v203_v2, %v1257_v56  ;;  %v205_v4 = vpop.f32.mrb[21].mxu0 }
 0x107   :  { %v206_v5 = vadd.f32 %v205_v4, %v1259_v57  ;;  %v207_v6 = vpop.f32.mrb[22].mxu0  ;;  %479 = vmatprep.mubr.bf16.mxu1 %v273_v1 }
 0x108   :  { %v208_v7 = vadd.f32 %v207_v6, %v1257_v56  ;;  %v209_v8 = vpop.f32.mrb[23].mxu0  ;;  %480 = vmatmul.mubr.bf16.gmra.mrb[16].mxu1 %v272_v0  ;;  %v252_v10 = vmax.f32 %v204_v3, 0.0 }
 0x109   :  { %v210_v9 = vadd.f32 %v209_v8, %v1259_v57  ;;  %v253_v12 = vmax.f32 %v206_v5, 0.0 }
 0x10a   :  { %v254_v11 = vmax.f32 %v208_v7, 0.0 }
 0x10b   :  { %v255_v13 = vmax.f32 %v210_v9, 0.0 }
 0x10c   :  { %v274_v14 = vpack.c.bf16 %v254_v11, %v252_v10 }
 0x10d   :  { %v275_v15 = vpack.c.bf16 %v255_v13, %v253_v12  ;;  %v213_v16 = vpop.f32.mrb[24].mxu0 }
 0x10e   :  { %v214_v17 = vadd.f32 %v213_v16, %v1257_v56  ;;  %v215_v18 = vpop.f32.mrb[25].mxu0 }
 0x10f   :  { %v216_v19 = vadd.f32 %v215_v18, %v1259_v57  ;;  %v217_v20 = vpop.f32.mrb[26].mxu0  ;;  %487 = vmatprep.mubr.bf16.mxu1 %v275_v15 }
 0x110   :  { %v218_v21 = vadd.f32 %v217_v20, %v1257_v56  ;;  %v219_v22 = vpop.f32.mrb[27].mxu0  ;;  %488 = vmatmul.mubr.bf16.gmra.mrb[20].mxu1 %v274_v14  ;;  %v256_v24 = vmax.f32 %v214_v17, 0.0 }
 0x111   :  { %v220_v23 = vadd.f32 %v219_v22, %v1259_v57  ;;  %v257_v26 = vmax.f32 %v216_v19, 0.0 }
 0x112   :  { %v258_v25 = vmax.f32 %v218_v21, 0.0 }
 0x113   :  { %v259_v27 = vmax.f32 %v220_v23, 0.0 }
 0x114   :  { %v276_v28 = vpack.c.bf16 %v258_v25, %v256_v24 }
 0x115   :  { %v277_v29 = vpack.c.bf16 %v259_v27, %v257_v26  ;;  %v223_v30 = vpop.f32.mrb[28].mxu0 }
 0x116   :  { %v224_v31 = vadd.f32 %v223_v30, %v1257_v56  ;;  %v225_v32 = vpop.f32.mrb[29].mxu0 }
 0x117   :  { %v226_v33 = vadd.f32 %v225_v32, %v1259_v57  ;;  %v227_v34 = vpop.f32.mrb[30].mxu0  ;;  %495 = vmatprep.mubr.bf16.mxu1 %v277_v29 }
 0x118   :  { %v228_v35 = vadd.f32 %v227_v34, %v1257_v56  ;;  %v229_v36 = vpop.f32.mrb[31].mxu0  ;;  %496 = vmatmul.mubr.bf16.gmra.mrb[24].mxu1 %v276_v28  ;;  %v260_v38 = vmax.f32 %v224_v31, 0.0  ;;  %v1032_v56 = vld [vmem:[%s1382_s5 + $0x38] sm:$0xff]  }
 0x119   :  { %v230_v37 = vadd.f32 %v229_v36, %v1259_v57  ;;  %v261_v40 = vmax.f32 %v226_v33, 0.0  ;;  %960 = vmatprep.subr.bf16.mxu0 %v1032_v56 }
 0x11a   :  { %v262_v39 = vmax.f32 %v228_v35, 0.0  ;;  %961 = vmatpush3.bf16.msra.mxu0 %v1032_v56 }
 0x11b   :  { %v263_v41 = vmax.f32 %v230_v37, 0.0 }
 0x11c   :  { %v278_v42 = vpack.c.bf16 %v262_v39, %v260_v38 }
 0x11d   :  { %v279_v43 = vpack.c.bf16 %v263_v41, %v261_v40 }
 0x11f   :  { %503 = vmatprep.mubr.bf16.mxu1 %v279_v43 }
 0x120   :  { %504 = vmatmul.mubr.bf16.gmra.mrb[28].mxu1 %v278_v42 }
 0x1bb   :  { %v873_v57 = vpop.f32.mrb[0].mxu1 }
 0x1bc   :  { %v874_v46 = vpop.f32.mrb[1].mxu1 }
 0x1bd   :  { %v875_v47 = vadd.f32 %v874_v46, %v873_v57  ;;  %v876_v48 = vpop.f32.mrb[2].mxu1 }
 0x1be   :  { %v877_v49 = vpop.f32.mrb[3].mxu1 }
 0x1bf   :  { %v450_v50 = vadd.f32 %v875_v47, %v1302_v45  ;;  %v878_v51 = vadd.f32 %v877_v49, %v876_v48 }
 0x1c1   :  { %v453_v52 = vadd.f32 %v878_v51, %v1302_v45  ;;  %v512_v53 = vmax.f32 %v450_v50, 0.0 }
 0x1c3   :  { %v513_v54 = vmax.f32 %v453_v52, 0.0  ;;  %v879_v55 = vpop.f32.mrb[4].mxu1 }
 0x1c4   :  { %v880_v58 = vpop.f32.mrb[5].mxu1 }
 0x1c5   :  { %v881_v59 = vadd.f32 %v880_v58, %v879_v55  ;;  %v882_v60 = vpop.f32.mrb[6].mxu1  ;;  %v528_v61 = vpack.c.bf16 %v513_v54, %v512_v53 }
 0x1c6   :  { %v883_v62 = vpop.f32.mrb[7].mxu1 }
 0x1c7   :  { %v458_v63 = vadd.f32 %v881_v59, %v1302_v45  ;;  %v884_v0 = vadd.f32 %v883_v62, %v882_v60  ;;  %962 = vmatprep.mubr.bf16.mxu0 %v528_v61 }
 0x1c9   :  { %v461_v1 = vadd.f32 %v884_v0, %v1302_v45  ;;  %v514_v2 = vmax.f32 %v458_v63, 0.0 }
 0x1cb   :  { %v515_v3 = vmax.f32 %v461_v1, 0.0  ;;  %v885_v4 = vpop.f32.mrb[8].mxu1 }
 0x1cc   :  { %v886_v5 = vpop.f32.mrb[9].mxu1 }
 0x1cd   :  { %v529_v6 = vpack.c.bf16 %v515_v3, %v514_v2  ;;  %v887_v7 = vadd.f32 %v886_v5, %v885_v4  ;;  %v888_v8 = vpop.f32.mrb[10].mxu1 }
 0x1ce   :  { %v889_v9 = vpop.f32.mrb[11].mxu1 }
 0x1cf   :  { %v466_v10 = vadd.f32 %v887_v7, %v1302_v45  ;;  %v890_v11 = vadd.f32 %v889_v9, %v888_v8  ;;  %963 = vmatmul.mubr.bf16.vlgmr.msra.gmra.mrb[32].mxu0 %v529_v6  ;;  %v1058_v8 = vmov 0.0   ;;  %v729_v9 = vld [vmem:[%s1385_s8] sm:$0xff] }
 0x1d0   :  { %978 = vmatprep.subr.bf16.mxu1 %v1058_v8  ;;  %994 = vmatprep.mubr.msk.bf16.mxu1 %vm1059_vm1, %v1058_v8 }
 0x1d1   :  { %v469_v12 = vadd.f32 %v890_v11, %v1302_v45  ;;  %v516_v13 = vmax.f32 %v466_v10, 0.0  ;;  %732 = vperm.xlu0 %1002, %v729_v9   ;;  %v1328_v10 = vld [vmem:[%s1383_s6] ss:$0 sm:$0xff] }
 0x1d3   :  { %v517_v14 = vmax.f32 %v469_v12, 0.0  ;;  %v891_v15 = vpop.f32.mrb[12].mxu1 }
 0x1d4   :  { %v892_v16 = vpop.f32.mrb[13].mxu1 }
 0x1d5   :  { %v893_v17 = vadd.f32 %v892_v16, %v891_v15  ;;  %v894_v18 = vpop.f32.mrb[14].mxu1  ;;  %v530_v19 = vpack.c.bf16 %v517_v14, %v516_v13 }
 0x1d6   :  { %v895_v20 = vpop.f32.mrb[15].mxu1 }
 0x1d7   :  { %v474_v21 = vadd.f32 %v893_v17, %v1302_v45  ;;  %v896_v22 = vadd.f32 %v895_v20, %v894_v18  ;;  %966 = vmatprep.mubr.bf16.mxu0 %v530_v19 }
 0x1d9   :  { %v477_v23 = vadd.f32 %v896_v22, %v1302_v45  ;;  %v518_v24 = vmax.f32 %v474_v21, 0.0 }
 0x1db   :  { %v519_v25 = vmax.f32 %v477_v23, 0.0  ;;  %v897_v26 = vpop.f32.mrb[16].mxu1 }
 0x1dc   :  { %v898_v27 = vpop.f32.mrb[17].mxu1 }
 0x1dd   :  { %v899_v28 = vadd.f32 %v898_v27, %v897_v26  ;;  %v900_v29 = vpop.f32.mrb[18].mxu1  ;;  %v531_v30 = vpack.c.bf16 %v519_v25, %v518_v24 }
 0x1de   :  { %v901_v31 = vpop.f32.mrb[19].mxu1 }
 0x1df   :  { %v482_v32 = vadd.f32 %v899_v28, %v1302_v45  ;;  %v902_v33 = vadd.f32 %v901_v31, %v900_v29  ;;  %967 = vmatmul.mubr.bf16.gmra.mrb[36].mxu0 %v531_v30 }
 0x1e1   :  { %v485_v34 = vadd.f32 %v902_v33, %v1302_v45  ;;  %v520_v35 = vmax.f32 %v482_v32, 0.0 }
 0x1e3   :  { %v521_v36 = vmax.f32 %v485_v34, 0.0  ;;  %v903_v37 = vpop.f32.mrb[20].mxu1 }
 0x1e4   :  { %v904_v38 = vpop.f32.mrb[21].mxu1 }
 0x1e5   :  { %v905_v39 = vadd.f32 %v904_v38, %v903_v37  ;;  %v906_v40 = vpop.f32.mrb[22].mxu1  ;;  %v532_v41 = vpack.c.bf16 %v521_v36, %v520_v35 }
 0x1e6   :  { %v907_v42 = vpop.f32.mrb[23].mxu1 }
 0x1e7   :  { %v490_v43 = vadd.f32 %v905_v39, %v1302_v45  ;;  %v908_v44 = vadd.f32 %v907_v42, %v906_v40  ;;  %970 = vmatprep.mubr.bf16.mxu0 %v532_v41 }
 0x1e9   :  { %v493_v56 = vadd.f32 %v908_v44, %v1302_v45  ;;  %v522_v57 = vmax.f32 %v490_v43, 0.0 }
 0x1eb   :  { %v523_v46 = vmax.f32 %v493_v56, 0.0  ;;  %v909_v47 = vpop.f32.mrb[24].mxu1 }
 0x1ec   :  { %v910_v48 = vpop.f32.mrb[25].mxu1 }
 0x1ed   :  { %v911_v49 = vadd.f32 %v910_v48, %v909_v47  ;;  %v912_v50 = vpop.f32.mrb[26].mxu1  ;;  %v533_v51 = vpack.c.bf16 %v523_v46, %v522_v57 }
 0x1ee   :  { %v913_v52 = vpop.f32.mrb[27].mxu1 }
 0x1ef   :  { %v498_v53 = vadd.f32 %v911_v49, %v1302_v45  ;;  %v914_v54 = vadd.f32 %v913_v52, %v912_v50  ;;  %971 = vmatmul.mubr.bf16.gmra.mrb[40].mxu0 %v533_v51 }
 0x1f1   :  { %v501_v55 = vadd.f32 %v914_v54, %v1302_v45  ;;  %v524_v58 = vmax.f32 %v498_v53, 0.0 }
 0x1f3   :  { %v525_v59 = vmax.f32 %v501_v55, 0.0  ;;  %v915_v60 = vpop.f32.mrb[28].mxu1 }
 0x1f4   :  { %v916_v61 = vpop.f32.mrb[29].mxu1 }
 0x1f5   :  { %v917_v62 = vadd.f32 %v916_v61, %v915_v60  ;;  %v918_v63 = vpop.f32.mrb[30].mxu1  ;;  %v534_v0 = vpack.c.bf16 %v525_v59, %v524_v58 }
 0x1f6   :  { %v919_v1 = vpop.f32.mrb[31].mxu1 }
 0x1f7   :  { %v506_v2 = vadd.f32 %v917_v62, %v1302_v45  ;;  %v920_v3 = vadd.f32 %v919_v1, %v918_v63  ;;  %974 = vmatprep.mubr.bf16.mxu0 %v534_v0 }
 0x1f9   :  { %v509_v4 = vadd.f32 %v920_v3, %v1302_v45  ;;  %v526_v5 = vmax.f32 %v506_v2, 0.0 }
 0x1fb   :  { %v527_v6 = vmax.f32 %v509_v4, 0.0 }
 0x1fd   :  { %v535_v7 = vpack.c.bf16 %v527_v6, %v526_v5 }
 0x1ff   :  { %975 = vmatmul.mubr.bf16.gmra.mrb[44].mxu0 %v535_v7 }
 0x2a2   :  { %v964_v45 = vpop.f32.mrb[32].mxu0 }
 0x2a3   :  { %v650_v11 = vadd.f32 %v964_v45, %v1328_v10  ;;  %v641_v12 = vpop.f32.mrb[33].mxu0 }
 0x2a4   :  { %v642_v13 = vadd.f32 %v1328_v10, %v641_v12  ;;  %v965_v14 = vpop.f32.mrb[34].mxu0  ;;  %v733_v12 = vpop.permute.xlu0 %732 }
 0x2a5   :  { %v653_v15 = vadd.f32 %v965_v14, %v1328_v10  ;;  %v644_v16 = vpop.f32.mrb[35].mxu0  ;;  %v706_v18 = vmax.f32 %v650_v11, 0.0 }
 0x2a6   :  { %v645_v17 = vadd.f32 %v1328_v10, %v644_v16  ;;  %v704_v20 = vmax.f32 %v642_v13, 0.0 }
 0x2a7   :  { %v707_v19 = vmax.f32 %v653_v15, 0.0 }
 0x2a8   :  { %v705_v21 = vmax.f32 %v645_v17, 0.0 }
 0x2a9   :  { %v722_v22 = vpack.c.bf16 %v707_v19, %v706_v18 }
 0x2aa   :  { %v721_v23 = vpack.c.bf16 %v705_v21, %v704_v20 }
 0x2ab   :  { %v743_v30 = vsel %vm735_vm2, %v722_v22, 0 }
 0x2ac   :  { %v740_v24 = vsel %vm735_vm2, %v721_v23, 0 }
 0x2ad   :  { %979 = vmatpush3.bf16.xpose.msra.mxu1 %v740_v24 }
 0x2ae   :  { %980 = vmatprep.subr.bf16.mxu1 %v1058_v8 }
 0x2b2   :  { %v968_v25 = vpop.f32.mrb[36].mxu0 }
 0x2b3   :  { %v666_v26 = vadd.f32 %v968_v25, %v1328_v10  ;;  %v657_v27 = vpop.f32.mrb[37].mxu0 }
 0x2b4   :  { %v658_v28 = vadd.f32 %v1328_v10, %v657_v27  ;;  %v969_v29 = vpop.f32.mrb[38].mxu0 }
 0x2b5   :  { %v669_v31 = vadd.f32 %v969_v29, %v1328_v10  ;;  %v660_v32 = vpop.f32.mrb[39].mxu0  ;;  %981 = vmatpush3.bf16.xpose.msra.mxu1 %v743_v30  ;;  %v710_v34 = vmax.f32 %v666_v26, 0.0 }
 0x2b6   :  { %v661_v33 = vadd.f32 %v1328_v10, %v660_v32  ;;  %982 = vmatprep.subr.bf16.mxu1 %v1058_v8  ;;  %v708_v36 = vmax.f32 %v658_v28, 0.0 }
 0x2b7   :  { %v711_v35 = vmax.f32 %v669_v31, 0.0 }
 0x2b8   :  { %v709_v37 = vmax.f32 %v661_v33, 0.0 }
 0x2b9   :  { %v724_v38 = vpack.c.bf16 %v711_v35, %v710_v34 }
 0x2ba   :  { %v723_v39 = vpack.c.bf16 %v709_v37, %v708_v36 }
 0x2bb   :  { %v749_v57 = vsel %vm735_vm2, %v724_v38, 0 }
 0x2bc   :  { %v746_v40 = vsel %vm735_vm2, %v723_v39, 0 }
 0x2bd   :  { %983 = vmatpush3.bf16.xpose.msra.mxu1 %v746_v40 }
 0x2be   :  { %984 = vmatprep.subr.bf16.mxu1 %v1058_v8 }
 0x2c2   :  { %v972_v41 = vpop.f32.mrb[40].mxu0 }
 0x2c3   :  { %v682_v42 = vadd.f32 %v972_v41, %v1328_v10  ;;  %v673_v43 = vpop.f32.mrb[41].mxu0 }
 0x2c4   :  { %v674_v44 = vadd.f32 %v1328_v10, %v673_v43  ;;  %v973_v56 = vpop.f32.mrb[42].mxu0 }
 0x2c5   :  { %v685_v46 = vadd.f32 %v973_v56, %v1328_v10  ;;  %v676_v47 = vpop.f32.mrb[43].mxu0  ;;  %985 = vmatpush3.bf16.xpose.msra.mxu1 %v749_v57  ;;  %v714_v49 = vmax.f32 %v682_v42, 0.0 }
 0x2c6   :  { %v677_v48 = vadd.f32 %v1328_v10, %v676_v47  ;;  %986 = vmatprep.subr.bf16.mxu1 %v1058_v8  ;;  %v712_v51 = vmax.f32 %v674_v44, 0.0 }
 0x2c7   :  { %v715_v50 = vmax.f32 %v685_v46, 0.0 }
 0x2c8   :  { %v713_v52 = vmax.f32 %v677_v48, 0.0 }
 0x2c9   :  { %v726_v53 = vpack.c.bf16 %v715_v50, %v714_v49 }
 0x2ca   :  { %v725_v54 = vpack.c.bf16 %v713_v52, %v712_v51 }
 0x2cb   :  { %v755_v63 = vsel %vm735_vm2, %v726_v53, 0 }
 0x2cc   :  { %v752_v55 = vsel %vm735_vm2, %v725_v54, 0 }
 0x2cd   :  { %987 = vmatpush3.bf16.xpose.msra.mxu1 %v752_v55 }
 0x2ce   :  { %988 = vmatprep.subr.bf16.mxu1 %v1058_v8 }
 0x2d2   :  { %v976_v58 = vpop.f32.mrb[44].mxu0 }
 0x2d3   :  { %v698_v59 = vadd.f32 %v976_v58, %v1328_v10  ;;  %v689_v60 = vpop.f32.mrb[45].mxu0 }
 0x2d4   :  { %v690_v61 = vadd.f32 %v1328_v10, %v689_v60  ;;  %v977_v62 = vpop.f32.mrb[46].mxu0 }
 0x2d5   :  { %v701_v0 = vadd.f32 %v977_v62, %v1328_v10  ;;  %v692_v1 = vpop.f32.mrb[47].mxu0  ;;  %989 = vmatpush3.bf16.xpose.msra.mxu1 %v755_v63  ;;  %v718_v3 = vmax.f32 %v698_v59, 0.0 }
 0x2d6   :  { %v693_v2 = vadd.f32 %v1328_v10, %v692_v1  ;;  %990 = vmatprep.subr.bf16.mxu1 %v1058_v8  ;;  %v716_v5 = vmax.f32 %v690_v61, 0.0  ;;  %v720_v10 = vld [vmem:[%s1384_s7] sm:$0xf] }
 0x2d7   :  { %v719_v4 = vmax.f32 %v701_v0, 0.0 }
 0x2d8   :  { %v717_v6 = vmax.f32 %v693_v2, 0.0 }
 0x2d9   :  { %v728_v7 = vpack.c.bf16 %v719_v4, %v718_v3 }
 0x2da   :  { %v727_v9 = vpack.c.bf16 %v717_v6, %v716_v5 }
 0x2db   :  { %v761_v11 = vsel %vm735_vm2, %v728_v7, 0 }
 0x2dc   :  { %v758_v45 = vsel %vm735_vm2, %v727_v9, 0 }
 0x2dd   :  { %991 = vmatpush3.bf16.xpose.msra.mxu1 %v758_v45 }
 0x2de   :  { %992 = vmatprep.subr.bf16.mxu1 %v1058_v8 }
 0x2e5   :  { %993 = vmatpush3.bf16.xpose.msra.mxu1 %v761_v11 }
 0x2ec   :  { %995 = vmatmul.mubr.msk.bf16.vlgmr.msra.gmra.mrb[32].mxu1 %vm735_vm2, %v720_v10 }
 0x3bf   :  { %v797_v13 = vpop.f32.mrb[32].mxu1 }
 0x3c0   :  { %v798_v14 = vadd.f32 %v797_v13, %v733_v12  ;;  %v996_v15 = vpop.f32.mrb[33].mxu1 }
 0x3c1   :  { %v800_v16 = vpop.f32.mrb[34].mxu1 }
 0x3c2   :  { %803 = vst [vmem:[#allocation2] sm:$0xff] %v798_v14  ;;  %v997_v17 = vpop.f32.mrb[35].mxu1 }
 0x3c3   :  { %1044 = shalt.err (!%p1041_p4)
}
 0x3c4   :  { %s1045_s15 = scalar_lea.hbm %s1386_s9, 128 }
 0x3c5   :  { %p1046_p5 = scmp.ne.s32.totalorder %s1386_s9, %s1045_s15  ;;  %p1049_p6 = scmp.lt.u32.totalorder %s1045_s15, %s1386_s9 }
 0x3c7   :  { %p1051_p7 = pnand %p1049_p6, %p1046_p5 }
 0x3c9   :  { %1054 = shalt.err (!%p1051_p7)
}
 0x3ca   :  { %813 = dma.vmem_to_hbm [thread:$0]  %s811_s12, 128, %s1386_s9, [#allocation3]  }
 0x3cb   :  { %1055 = dma.done.wait [#allocation3], 128  }
 0x3cc   :  { %1056 = vsyncadd [#allocation3], 4294967168 }
 0x3cd   :  { %817 = vsyncpa [#allocation3], 1 }

</bundles_post_ra>
